<compile_context>
chip_gen: v7x
topology: tpu7x:2x2x1
jax: 0.10.0
libtpu: 0.0.40
codegen_flags: <defaults>
</compile_context>

<pallas_src>
import jax
import jax.numpy as jnp
from jax.experimental import pallas as pl
from jax.experimental.pallas import tpu as pltpu


def ffn_kernel(x_ref, w1_ref, s1_ref, t1_ref, w2_ref, s2_ref, t2_ref, o_ref):
    """Fused: o = bn2(conv2(relu(bn1(conv1(x))))) + x on a (C, tile_hw) slab."""
    x = x_ref[...]                                   # (C, thw), input dtype
    x_f32 = x.astype(jnp.float32)
    # conv1 (1x1) as W1 @ x  + folded BN1 scale/shift (per-channel column vectors)
    h = jnp.dot(w1_ref[...], x.astype(w1_ref.dtype),
                preferred_element_type=jnp.float32)  # (C, thw)
    h = h * s1_ref[...] + t1_ref[...]
    # ReLU
    h = jnp.maximum(h, 0.0)
    # conv2 (1x1) as W2 @ h + folded BN2 scale/shift
    y = jnp.dot(w2_ref[...], h.astype(w2_ref.dtype),
                preferred_element_type=jnp.float32)
    y = y * s2_ref[...] + t2_ref[...]
    # residual (DropPath(0.0) == Identity); x is already live in vregs
    o_ref[...] = (y + x_f32).astype(o_ref.dtype)


def _pick_spatial_tile(hw, target):
    """Largest multiple of 128 that divides hw and is <= target; else whole extent."""
    if hw <= target:
        return hw
    t = (target // 128) * 128
    while t >= 128:
        if hw % t == 0:
            return t
        t -= 128
    # TODO(synk): pad H*W up to a multiple of 128 for shapes with no clean divisor.
    return hw


def ffn_pallas(x_nchw, params, *, tile_hw=2048, use_bf16_matmul=False):
    """x_nchw: (N, C, H, W).  Returns (N, C, H, W).  Runs natively on NCHW layout."""
    N, C, H, W = x_nchw.shape
    HW = H * W
    thw = _pick_spatial_tile(HW, tile_hw)
    n_hw = HW // thw

    w1, s1, t1, w2, s2, t2 = params  # w: (C_out, C_in), scale/shift: (C, 1)
    if use_bf16_matmul:
        # bf16 MXU fast path; scale/shift/ReLU/residual stay in f32 inside the kernel.
        w1 = w1.astype(jnp.bfloat16)
        w2 = w2.astype(jnp.bfloat16)

    x3d = x_nchw.reshape(N, C, HW)  # free reshape, stays NCHW-contiguous

    # VMEM budget: double-buffered x/out tiles + resident weights + scale/shift (+50% headroom).
    itm = x_nchw.dtype.itemsize
    w_itm = w1.dtype.itemsize
    vmem_bytes = int(1.5 * (2 * 2 * C * thw * itm            # x + out, double-buffered
                            + 2 * 2 * C * C * w_itm          # w1, w2 (conservatively 2 bufs)
                            + 4 * 2 * C * 4))                 # scale/shift vectors
    vmem_bytes = min(max(vmem_bytes, 16 * 1024 * 1024), 64 * 1024 * 1024)

    cost = pl.CostEstimate(
        flops=4 * N * HW * C * C,
        transcendentals=0,
        bytes_accessed=2 * N * HW * C * itm + 2 * C * C * w_itm + 4 * C * 4,
    )

    out3d = pl.pallas_call(
        ffn_kernel,
        out_shape=jax.ShapeDtypeStruct((N, C, HW), x_nchw.dtype),
        grid_spec=pltpu.PrefetchScalarGridSpec(
            num_scalar_prefetch=0,
            grid=(N, n_hw),
            in_specs=[
                pl.BlockSpec((None, C, thw), lambda n, j: (n, 0, j)),  # x slab (C, thw)
                pl.BlockSpec((C, C), lambda n, j: (0, 0)),             # w1 (resident)
                pl.BlockSpec((C, 1), lambda n, j: (0, 0)),             # scale1
                pl.BlockSpec((C, 1), lambda n, j: (0, 0)),             # shift1
                pl.BlockSpec((C, C), lambda n, j: (0, 0)),             # w2 (resident)
                pl.BlockSpec((C, 1), lambda n, j: (0, 0)),             # scale2
                pl.BlockSpec((C, 1), lambda n, j: (0, 0)),             # shift2
            ],
            out_specs=pl.BlockSpec((None, C, thw), lambda n, j: (n, 0, j)),
        ),
        compiler_params=pltpu.CompilerParams(
            dimension_semantics=("parallel", "parallel"),
            vmem_limit_bytes=vmem_bytes,
        ),
        cost_estimate=cost,
    )(x3d, w1, s1, t1, w2, s2, t2)

    return out3d.reshape(N, C, H, W)


def make_params(key, in_features, out_features, eps=1e-5):
    """Deterministic parameters matching the PyTorch module's shapes (eval-mode BN).

    conv1: (in, in, 1, 1) + bias(in);  bn1: gamma/beta/mean/var over in
    conv2: (out, in, 1, 1) + bias(out); bn2: gamma/beta/mean/var over out
    Residual add requires out_features == in_features.
    """
    assert out_features == in_features
    ks = jax.random.split(key, 8)
    C = in_features

    w1_pt = jax.random.normal(ks[0], (C, C, 1, 1), jnp.float32) * 0.1
    b1 = jax.random.normal(ks[1], (C,), jnp.float32) * 0.1
    w2_pt = jax.random.normal(ks[2], (C, C, 1, 1), jnp.float32) * 0.1
    b2 = jax.random.normal(ks[3], (C,), jnp.float32) * 0.1

    gamma1 = 1.0 + 0.1 * jax.random.normal(ks[4], (C,), jnp.float32)
    beta1 = 0.1 * jax.random.normal(ks[5], (C,), jnp.float32)
    gamma2 = 1.0 + 0.1 * jax.random.normal(ks[6], (C,), jnp.float32)
    beta2 = 0.1 * jax.random.normal(ks[7], (C,), jnp.float32)

    # eval-mode BN running stats
    mean1 = jnp.zeros((C,), jnp.float32)
    var1 = jnp.ones((C,), jnp.float32)
    mean2 = jnp.zeros((C,), jnp.float32)
    var2 = jnp.ones((C,), jnp.float32)

    # Fold:  bn(conv(x) + b) = conv(x)*scale + ((b - mean)*scale + beta)
    scale1 = gamma1 / jnp.sqrt(var1 + eps)
    shift1 = (b1 - mean1) * scale1 + beta1
    scale2 = gamma2 / jnp.sqrt(var2 + eps)
    shift2 = (b2 - mean2) * scale2 + beta2

    # Keep PyTorch orientation (C_out, C_in): the kernel computes W @ x in NCHW layout.
    w1 = w1_pt[:, :, 0, 0]
    w2 = w2_pt[:, :, 0, 0]

    return (w1, scale1.reshape(C, 1), shift1.reshape(C, 1),
            w2, scale2.reshape(C, 1), shift2.reshape(C, 1))


def ffn_reference(x_nchw, params):
    """Plain-JAX reference (NCHW) for sanity checking."""
    w1, s1, t1, w2, s2, t2 = params
    N, C, H, W = x_nchw.shape
    x3 = x_nchw.reshape(N, C, H * W).astype(jnp.float32)
    h = jnp.maximum(jnp.einsum('oc,ncp->nop', w1, x3) * s1 + t1, 0.0)
    y = jnp.einsum('oc,ncp->nop', w2, h) * s2 + t2 + x3
    return y.reshape(N, C, H, W).astype(x_nchw.dtype)


if __name__ == "__main__":
    key = jax.random.PRNGKey(0)
    kx, kp = jax.random.split(key)

    N, C, H, W = 2, 4, 16, 16          # in_features = out_features = 4
    x = jax.random.normal(kx, (N, C, H, W), jnp.float32)
    params = make_params(kp, C, C)

    out = ffn_pallas(x, params, tile_hw=2048, use_bf16_matmul=False)
    out = jax.block_until_ready(out)

    ref = ffn_reference(x, params)
    assert out.shape == (N, C, H, W)
    assert jnp.allclose(out, ref, atol=1e-4, rtol=1e-4)

    print("KERNEL_OK")
</pallas_src>

<mosaic_0001>
module attributes {stable_mosaic.version = 11 : i64} {
  func.func @ffn_kernel(%arg0: i32, %arg1: i32, %arg2: memref<1x4x256xf32, #tpu.memory_space<vmem>>, %arg3: memref<4x4xf32, #tpu.memory_space<vmem>>, %arg4: memref<4x1xf32, #tpu.memory_space<vmem>>, %arg5: memref<4x1xf32, #tpu.memory_space<vmem>>, %arg6: memref<4x4xf32, #tpu.memory_space<vmem>>, %arg7: memref<4x1xf32, #tpu.memory_space<vmem>>, %arg8: memref<4x1xf32, #tpu.memory_space<vmem>>, %arg9: memref<1x4x256xf32, #tpu.memory_space<vmem>>) attributes {dimension_semantics = [#tpu.dimension_semantics<parallel>, #tpu.dimension_semantics<parallel>], iteration_bounds = array<i64: 2, 1>, scalar_prefetch = 0 : i64, scratch_operands = 0 : i64, tpu.core_type = #tpu.core_type<tc>, window_params = [{transform_indices = @transform_0, window_bounds = array<i64: 1, 4, 256>}, {pipeline_mode = #tpu.pipeline_mode<synchronous>, transform_indices = @transform_1, window_bounds = array<i64: 4, 4>}, {pipeline_mode = #tpu.pipeline_mode<synchronous>, transform_indices = @transform_2, window_bounds = array<i64: 4, 1>}, {pipeline_mode = #tpu.pipeline_mode<synchronous>, transform_indices = @transform_3, window_bounds = array<i64: 4, 1>}, {pipeline_mode = #tpu.pipeline_mode<synchronous>, transform_indices = @transform_4, window_bounds = array<i64: 4, 4>}, {pipeline_mode = #tpu.pipeline_mode<synchronous>, transform_indices = @transform_5, window_bounds = array<i64: 4, 1>}, {pipeline_mode = #tpu.pipeline_mode<synchronous>, transform_indices = @transform_6, window_bounds = array<i64: 4, 1>}, {transform_indices = @transform_7, window_bounds = array<i64: 1, 4, 256>}]} {
    %c0 = arith.constant 0 : index
    %c0_0 = arith.constant 0 : index
    %c0_1 = arith.constant 0 : index
    %0 = vector.load %arg2[%c0, %c0_0, %c0_1] : memref<1x4x256xf32, #tpu.memory_space<vmem>>, vector<1x4x256xf32>
    %1 = vector.shape_cast %0 : vector<1x4x256xf32> to vector<4x256xf32>
    %c0_2 = arith.constant 0 : index
    %c0_3 = arith.constant 0 : index
    %2 = vector.load %arg3[%c0_2, %c0_3] : memref<4x4xf32, #tpu.memory_space<vmem>>, vector<4x4xf32>
    %cst = arith.constant dense<0.000000e+00> : vector<4x256xf32>
    %3 = tpu.matmul %2, %1, %cst {dimension_numbers = #tpu.dot_dimension_numbers<[1], [0], [0], [1], [0, 0, 1, 1], [], []>} : vector<4x4xf32>, vector<4x256xf32>, vector<4x256xf32> -> vector<4x256xf32>
    %c0_4 = arith.constant 0 : index
    %c0_5 = arith.constant 0 : index
    %4 = vector.load %arg4[%c0_4, %c0_5] : memref<4x1xf32, #tpu.memory_space<vmem>>, vector<4x1xf32>
    %5 = vector.broadcast %4 : vector<4x1xf32> to vector<4x256xf32>
    %6 = arith.mulf %3, %5 : vector<4x256xf32>
    %c0_6 = arith.constant 0 : index
    %c0_7 = arith.constant 0 : index
    %7 = vector.load %arg5[%c0_6, %c0_7] : memref<4x1xf32, #tpu.memory_space<vmem>>, vector<4x1xf32>
    %8 = vector.broadcast %7 : vector<4x1xf32> to vector<4x256xf32>
    %9 = arith.addf %6, %8 : vector<4x256xf32>
    %cst_8 = arith.constant 0.000000e+00 : f32
    %10 = vector.broadcast %cst_8 : f32 to vector<4x256xf32>
    %11 = arith.maximumf %9, %10 : vector<4x256xf32>
    %c0_9 = arith.constant 0 : index
    %c0_10 = arith.constant 0 : index
    %12 = vector.load %arg6[%c0_9, %c0_10] : memref<4x4xf32, #tpu.memory_space<vmem>>, vector<4x4xf32>
    %cst_11 = arith.constant dense<0.000000e+00> : vector<4x256xf32>
    %13 = tpu.matmul %12, %11, %cst_11 {dimension_numbers = #tpu.dot_dimension_numbers<[1], [0], [0], [1], [0, 0, 1, 1], [], []>} : vector<4x4xf32>, vector<4x256xf32>, vector<4x256xf32> -> vector<4x256xf32>
    %c0_12 = arith.constant 0 : index
    %c0_13 = arith.constant 0 : index
    %14 = vector.load %arg7[%c0_12, %c0_13] : memref<4x1xf32, #tpu.memory_space<vmem>>, vector<4x1xf32>
    %15 = vector.broadcast %14 : vector<4x1xf32> to vector<4x256xf32>
    %16 = arith.mulf %13, %15 : vector<4x256xf32>
    %c0_14 = arith.constant 0 : index
    %c0_15 = arith.constant 0 : index
    %17 = vector.load %arg8[%c0_14, %c0_15] : memref<4x1xf32, #tpu.memory_space<vmem>>, vector<4x1xf32>
    %18 = vector.broadcast %17 : vector<4x1xf32> to vector<4x256xf32>
    %19 = arith.addf %16, %18 : vector<4x256xf32>
    %20 = arith.addf %19, %1 : vector<4x256xf32>
    %c0_16 = arith.constant 0 : index
    %c0_17 = arith.constant 0 : index
    %c0_18 = arith.constant 0 : index
    %21 = vector.load %arg9[%c0_16, %c0_17, %c0_18] : memref<1x4x256xf32, #tpu.memory_space<vmem>>, vector<1x4x256xf32>
    %22 = vector.shape_cast %21 : vector<1x4x256xf32> to vector<4x256xf32>
    %23 = vector.shape_cast %20 : vector<4x256xf32> to vector<1x4x256xf32>
    tpu.vector_store %arg9[%c0_16, %c0_17, %c0_18], %23 {strides = array<i32>} : memref<1x4x256xf32, #tpu.memory_space<vmem>>, vector<1x4x256xf32>,
    return
  }
  func.func @transform_0(%arg0: i32, %arg1: i32) -> (i32, i32, i32) {
    %c0_i32 = arith.constant 0 : i32
    %c0_i32_0 = arith.constant 0 : i32
    return %arg0, %c0_i32, %arg1 : i32, i32, i32
  }
  func.func @transform_1(%arg0: i32, %arg1: i32) -> (i32, i32) {
    %c0_i32 = arith.constant 0 : i32
    %c0_i32_0 = arith.constant 0 : i32
    %c0_i32_1 = arith.constant 0 : i32
    return %c0_i32, %c0_i32_0 : i32, i32
  }
  func.func @transform_2(%arg0: i32, %arg1: i32) -> (i32, i32) {
    %c0_i32 = arith.constant 0 : i32
    %c0_i32_0 = arith.constant 0 : i32
    %c0_i32_1 = arith.constant 0 : i32
    return %c0_i32, %c0_i32_0 : i32, i32
  }
  func.func @transform_3(%arg0: i32, %arg1: i32) -> (i32, i32) {
    %c0_i32 = arith.constant 0 : i32
    %c0_i32_0 = arith.constant 0 : i32
    %c0_i32_1 = arith.constant 0 : i32
    return %c0_i32, %c0_i32_0 : i32, i32
  }
  func.func @transform_4(%arg0: i32, %arg1: i32) -> (i32, i32) {
    %c0_i32 = arith.constant 0 : i32
    %c0_i32_0 = arith.constant 0 : i32
    %c0_i32_1 = arith.constant 0 : i32
    return %c0_i32, %c0_i32_0 : i32, i32
  }
  func.func @transform_5(%arg0: i32, %arg1: i32) -> (i32, i32) {
    %c0_i32 = arith.constant 0 : i32
    %c0_i32_0 = arith.constant 0 : i32
    %c0_i32_1 = arith.constant 0 : i32
    return %c0_i32, %c0_i32_0 : i32, i32
  }
  func.func @transform_6(%arg0: i32, %arg1: i32) -> (i32, i32) {
    %c0_i32 = arith.constant 0 : i32
    %c0_i32_0 = arith.constant 0 : i32
    %c0_i32_1 = arith.constant 0 : i32
    return %c0_i32, %c0_i32_0 : i32, i32
  }
  func.func @transform_7(%arg0: i32, %arg1: i32) -> (i32, i32, i32) {
    %c0_i32 = arith.constant 0 : i32
    %c0_i32_0 = arith.constant 0 : i32
    return %arg0, %c0_i32, %arg1 : i32, i32, i32
  }
}

</mosaic_0001>

<bundles_post_ra>
// kernel: tpu_custom_call.1
= control target key start
LH: loop header
LB: loop body
LE: loop exit
PB: predicated region body
PF: predicated region fallthrough
CT: control target
= control target key end

     0   :  { %12 = vsyncpa [#allocation3], 0  ;;  %s948_s0 = inlined_call_operand.vmem [shape: f32[2,4,256], index: 0, kind: input, shape index: {}]   ;;  %s949_s1 = inlined_call_operand.vmem [shape: f32[4,4], index: 1, kind: input, shape index: {}]   ;;  %s950_s2 = inlined_call_operand.vmem [shape: f32[4,1], index: 2, kind: input, shape index: {}]   ;;  %s951_s3 = inlined_call_operand.vmem [shape: f32[4,1], index: 3, kind: input, shape index: {}]   ;;  %s952_s4 = inlined_call_operand.vmem [shape: f32[4,4], index: 4, kind: input, shape index: {}]   ;;  %s953_s5 = inlined_call_operand.vmem [shape: f32[4,1], index: 5, kind: input, shape index: {}]   ;;  %s954_s6 = inlined_call_operand.vmem [shape: f32[4,1], index: 6, kind: input, shape index: {}]   ;;  %s955_s7 = inlined_call_operand.hbm [shape: f32[2,4,256], index: 7, kind: output, shape index: {}]  }
   0x1   :  { %14 = vsyncpa [#allocation3 + $0x1], 0  ;;  %s812_s24 = smov 0   ;;  %s814_s25 = smov 0  }
   0x2   :  { %s816_s26 = smov 0   ;;  %s818_s27 = smov 0  }
   0x3   :  { %s820_s28 = smov 0   ;;  %s822_s29 = smov 0  }
   0x4 LB: > { %s608_s30 = sadd.s32 4294967295, %s767_s29   ;;  %s609_s8 = sadd.s32 4294967294, %s767_s29   ;;  %s767_s29 = sphi %s822_s29, %s20_s29   ;;  %s763_s28 = sphi %s820_s28, %s962_s28   ;;  %s759_s27 = sphi %s818_s27, %s961_s27   ;;  %s755_s26 = sphi %s816_s26, %s960_s26   ;;  %s751_s25 = sphi %s814_s25, %s959_s25   ;;  %s747_s24 = sphi %s812_s24, %s958_s24  }
   0x5   : > { %s32_s9 = sadd.s32 1, %s763_s28  ;;  %s195_s10 = sadd.s32 1, %s755_s26 }
   0x6   : > { %p34_p0 = scmp.ge.s32.totalorder %s32_s9, 2  ;;  %p205_p1 = scmp.ne.s32.totalorder %s755_s26, %s751_s25 }
   0x7   : > { %p206_p2 = scmp.eq.s32.totalorder %s608_s30, 1  ;;  %p211_p3 = scmp.ne.s32.totalorder %s751_s25, %s747_s24 }
   0x8   : > { %s964_s9 = smov (%p34_p0, %s32_s9), 0  ;;  %p212_p5 = scmp.eq.s32.totalorder %s609_s8, 1 }
   0x9   : > { %p852_p4 = por %p206_p2, %p205_p1  ;;  %s190_s12 = ssub.s32 %s763_s28, %s964_s9 }
   0xa   : > { %p612_p6 = scmp.ge.s32.totalorder %s767_s29, 1  ;;  %p193_p7 = scmp.eq.s32.totalorder %s190_s12, 0 }
   0xb   : > { %p859_p8 = por %p212_p5, %p211_p3  ;;  %p261_p9 = scmp.lt.s32.totalorder %s767_s29, 3 }
   0xc   : > { %s865_s14 = scalar_select %p193_p7, %s755_s26, %s195_s10  }
   0xd   : > { %p262_p10 = pnand %p612_p6, %p261_p9 }
   0xe   : > { %p298_p11 = scmp.lt.s32.totalorder (!%p262_p10), %s759_s27, 1  ;;  %v769_v0 = vmov (!%p262_p10), 0.0   ;;  %v392_v1 = vld [vmem:[%s950_s2] sm:$0xf] (!%p262_p10)  ;;  %v770_v2 = vmov (!%p262_p10), 0   ;;  %vm316_vm0 = vcmask (!%p262_p10), 1043456  }
   0xf   : > { %265 = sbr.rel (%p262_p10) target bundleno = 487 (0x1e7), region = 48  ;;  %385 = vmatprep.mubr.f32.mxu0 (!%p262_p10), %v769_v0  ;;  %484 = vmatprep.mubr.f32.mxu1 (!%p262_p10), %v769_v0  ;;  %v400_v3 = vld [vmem:[%s951_s3] sm:$0xf] (!%p262_p10)  ;;  %vm312_vm1 = vcmask (!%p262_p10), 31744   ;;  %s294_s19 = sand.u32 (!%p262_p10), 1, %s751_s25  }
  0x10   : > { %686 = vset.pattern.permute.xlu0 (!%p262_p10), %v770_v2  ;;  %687 = vset.pattern.permute.xlu1 (!%p262_p10), %v770_v2  ;;  %v309_v6 = vld [vmem:[%s949_s1] sm:$0xf] (!%p262_p10)  ;;  %s613_s20 = sshll.u32 (!%p262_p10), %s294_s19, 3  ;;  %s628_s21 = sshll.u32 (!%p262_p10), %s759_s27, 7 }
  0x11   : > { %395 = vperm.xlu0 (!%p262_p10), %686, %v392_v1   ;;  %v491_v7 = vld [vmem:[%s953_s5] sm:$0xf] (!%p262_p10)  ;;  %s296_s22 = scalar_lea.vmem (!%p262_p10), [#allocation2], %s613_s20  ;;  %s901_s10 = scalar_lea.hbm (!%p262_p10), %s955_s7, %s628_s21 }
  0x12   : > { %494 = vperm.xlu1 (!%p262_p10), %687, %v491_v7   ;;  %v499_v8 = vld [vmem:[%s954_s6] sm:$0xf] (!%p262_p10)  ;;  %s516_s12 = scalar_lea.sflag (!%p262_p10), [#allocation3], %s294_s19 }
  0x13   : > { %v410_v19 = vld [vmem:[%s952_s4] sm:$0xf] (!%p262_p10) }
  0x15   : > { %403 = vperm.xlu0 (!%p262_p10), %686, %v400_v3  }
  0x16   : > { %s299_s17 = scalar_select %p298_p11, %s759_s27, 1  ;;  %502 = vperm.xlu1 %687, %v499_v8  }
  0x17   : > { %s771_s27 = smov [#allocation2]  }
  0x18   : > { %s627_s18 = sshll.u32 %s299_s17, 3  ;;  %s693_s16 = sshll.u32 %s771_s27, 4  ;;  %s694_s16 = int_to_ptr.vmem [resolvable:$false] %s693_s16 }
  0x19   : > { %s305_s23 = scalar_lea.vmem %s948_s0, %s627_s18  ;;  %s695_s17 = scalar_lea.vmem %s694_s16, 256 }
  0x1a   : > { %v308_v4 = vld [vmem:[%s305_s23] sm:$0xff]  ;;  %s532_s23 = sshll.u32 %s296_s22, 4  ;;  %s903_s23 = int_to_ptr.vmem [resolvable:$true] %s532_s23 }
  0x1b   : > { %v311_v5 = vcombine.high %v308_v4, %v308_v4  ;;  %s689_s15 = scalar_lea.vmem %s903_s23, 128  ;;  %p696_p1 = scmp.lt.s32.totalorder %s903_s23, %s694_s16 }
  0x1c   : > { %p690_p12 = scmp.ne.s32.totalorder %s903_s23, %s689_s15  ;;  %p697_p2 = scmp.lt.s32.totalorder %s695_s17, %s689_s15 }
  0x1d   : > { %616 = vmatprep.subr.msk.mxu0 %vm316_vm0, %v311_v5 }
  0x1e   : > { %617 = vmatpush1.msk.msra.mxu0 %vm316_vm0, %v308_v4  ;;  %p691_p13 = pnand %p690_p12, %p852_p4  ;;  %p698_p3 = por %p697_p2, %p696_p1 }
  0x1f   : > { %618 = vmatmul.mubr.msk.f32.vlgmr.msra.gmra.mrb[0].mxu0 %vm312_vm1, %v309_v6 }
  0x20   : > { %p692_p0 = pneg %p691_p13 }
  0x22   : > { %p699_p5 = pnand %p698_p3, %p692_p0 }
  0x90   : > { %v396_v9 = vpop.permute.xlu0 %395 }
  0x91   : > { %v495_v20 = vpop.permute.xlu1 %494 }
  0x94   : > { %v404_v13 = vpop.permute.xlu0 %403 }
  0x95   : > { %v503_v24 = vpop.permute.xlu1 %502 }
  0xf2   : > { %v387_v10 = vpop.f32.mrb[0].mxu0 }
  0xf3   : > { %v398_v11 = vmul.f32 %v396_v9, %v387_v10  ;;  %v389_v12 = vpop.f32.mrb[1].mxu0 }
  0xf4   : > { %v399_v14 = vmul.f32 %v396_v9, %v389_v12 }
  0xf5   : > { %v406_v15 = vadd.f32 %v404_v13, %v398_v11 }
  0xf6   : > { %v407_v16 = vadd.f32 %v404_v13, %v399_v14 }
  0xf7   : > { %v408_v18 = vmax.f32 %v406_v15, 0.0 }
  0xf8   : > { %v409_v17 = vmax.f32 %v407_v16, 0.0 }
  0xfa   : > { %619 = vmatprep.subr.msk.mxu1 %vm316_vm0, %v409_v17 }
  0xfb   : > { %620 = vmatpush1.msk.msra.mxu1 %vm316_vm0, %v408_v18 }
  0xfc   : > { %621 = vmatmul.mubr.msk.f32.vlgmr.msra.gmra.mrb[0].mxu1 %vm312_vm1, %v410_v19 }
 0x1cf   : > { %v486_v21 = vpop.f32.mrb[0].mxu1 }
 0x1d0   : > { %v497_v22 = vmul.f32 %v495_v20, %v486_v21  ;;  %v488_v23 = vpop.f32.mrb[1].mxu1 }
 0x1d1   : > { %v498_v25 = vmul.f32 %v495_v20, %v488_v23 }
 0x1d2   : > { %v505_v26 = vadd.f32 %v503_v24, %v497_v22 }
 0x1d3   : > { %v506_v27 = vadd.f32 %v503_v24, %v498_v25 }
 0x1d4   : > { %v508_v28 = vadd.f32 %v505_v26, %v308_v4 }
 0x1d5   : > { %v509_v29 = vadd.f32 %v506_v27, %v311_v5 }
 0x1d7   : > { %v512_v30 = vcombine.low %v508_v28, %v509_v29 }
 0x1d9   : > { %514 = vst [vmem:[%s296_s22] sm:$0xff] %v512_v30 }
 0x1da   : > { %702 = shalt.err (!%p699_p5)
}
 0x1db   : > { %s703_s18 = scalar_lea.hbm %s901_s10, 128  ;;  %s707_s21 = scalar_lea.hbm %s955_s7, 256 }
 0x1dc   : > { %p704_p6 = scmp.ne.s32.totalorder %s901_s10, %s703_s18  ;;  %p708_p10 = scmp.lt.u32.totalorder %s901_s10, %s955_s7 }
 0x1dd   : > { %p709_p11 = scmp.lt.u32.totalorder %s707_s21, %s703_s18  ;;  %p711_p13 = scmp.lt.u32.totalorder %s703_s18, %s901_s10 }
 0x1de   : > { %p705_p7 = pnand %p704_p6, %p852_p4 }
 0x1df   : > { %p710_p12 = por %p709_p11, %p708_p10 }
 0x1e0   : > { %p706_p9 = pneg %p705_p7 }
 0x1e1   : > { %p712_p0 = por %p711_p13, %p710_p12 }
 0x1e3   : > { %p713_p1 = pnand %p712_p0, %p706_p9 }
 0x1e5   : > { %716 = shalt.err (!%p713_p1)
}
 0x1e6   : > { %629 = dma.vmem_to_hbm [thread:$0]  (%p852_p4), %s903_s23, 128, %s901_s10, %s516_s12  }
 0x1e7 PF: > { %p635_p2 = scmp.ge.s32.totalorder %s767_s29, 2  ;;  %s544_s8 = sand.u32 1, %s747_s24  }
 0x1e8   : > { %s545_s15 = scalar_lea.sflag [#allocation3], %s544_s8 }
 0x1e9   : > { %p632_p3 = pnand %p635_p2, %p859_p8 }
 0x1eb   : > { %742 = dma.done.wait (!%p632_p3), %s545_s15, 128  }
 0x1ec   : > { %744 = vsyncadd (!%p632_p3), %s545_s15, 4294967168  ;;  %s20_s29 = sadd.s32 1, %s767_s29   ;;  %s958_s24 = smov %s751_s25 }
 0x1ed   : > { %p17_p5 = scmp.ge.s32.totalorder %s20_s29, 4   ;;  %s959_s25 = smov %s755_s26 }
 0x1ee   : > { %s960_s26 = smov %s865_s14  ;;  %s961_s27 = smov %s763_s28 }
 0x1ef   : > { %s962_s28 = smov %s964_s9  ;;  %19 = sbr.rel (!%p17_p5) target bundleno = 4 (0x4), region = 83 }
 0x1f6   :  { %550 = vsyncpa [#allocation3], 1 }
 0x1f7   :  { %552 = vsyncpa [#allocation3 + $0x1], 1 }

</bundles_post_ra>
